<compile_context>
chip_gen: v7x
topology: tpu7x:2x2x1
jax: 0.10.0
libtpu: 0.0.40
codegen_flags: <defaults>
</compile_context>

<pallas_src>
import functools

import numpy as np
import jax
import jax.numpy as jnp
from jax import lax
from jax.experimental import pallas as pl
from jax.experimental.pallas import tpu as pltpu


# ---------------------------------------------------------------------------
# Pallas kernels.
#   p_ref   : (9*nIn, TM)    im2col patch columns for TM output pixels (lane-dense)
#   w_ref   : (nConv, 9*nIn) conv weights with BN1 scale folded in
#   prm_ref : (nOut, 8)      packed per-channel vectors:
#                              col 0: BN1 shift   (rows [0, nConv))
#                              col 1: PReLU1 alpha(rows [0, nConv))
#                              col 2: BN2 scale, col 3: BN2 shift, col 4: PReLU2 alpha
#   o_ref   : (nOut, TM)     output tile (lane-dense, single full store)
# ---------------------------------------------------------------------------
def _downsample_concat_kernel(p_ref, w_ref, prm_ref, o_ref, *, n_conv, n_in):
    p = p_ref[...]                                                  # (9*nIn, TM)
    conv = jnp.dot(w_ref[...], p, preferred_element_type=jnp.float32)

    prm = prm_ref[...]
    b1 = prm[:n_conv, 0:1]
    a1 = prm[:n_conv, 1:2]
    s2 = prm[:, 2:3]
    b2 = prm[:, 3:4]
    a2 = prm[:, 4:5]

    # BN1 shift (scale already folded into w) + PReLU1
    y = conv + b1
    y = jnp.where(y >= 0, y, a1 * y)

    # MaxPool 2x2 stride 2 of the original input, recovered from the im2col taps
    # (ky,kx) in {(1,1),(1,2),(2,1),(2,2)} -> patch rows [4,5,7,8]*nIn.
    # (Valid because H, W are even, so these taps never touch the zero padding.)
    mp = jnp.maximum(
        jnp.maximum(p[4 * n_in:5 * n_in, :], p[5 * n_in:6 * n_in, :]),
        jnp.maximum(p[7 * n_in:8 * n_in, :], p[8 * n_in:9 * n_in, :]))

    # channel concat -> BN2 + PReLU2 -> single lane-dense full-tile store
    z = jnp.concatenate([y, mp], axis=0) * s2 + b2
    o_ref[...] = jnp.where(z >= 0, z, a2 * z)


def _downsample_kernel(p_ref, w_ref, prm_ref, o_ref):
    # nIn >= nOut branch: no max-pool concat (nConv == nOut)
    conv = jnp.dot(w_ref[...], p_ref[...], preferred_element_type=jnp.float32)
    prm = prm_ref[...]
    b1 = prm[:, 0:1]
    a1 = prm[:, 1:2]
    s2 = prm[:, 2:3]
    b2 = prm[:, 3:4]
    a2 = prm[:, 4:5]
    y = conv + b1
    y = jnp.where(y >= 0, y, a1 * y)
    z = y * s2 + b2
    o_ref[...] = jnp.where(z >= 0, z, a2 * z)


# ---------------------------------------------------------------------------
# Tiling: largest lane tile (multiple of 128, <=1024) whose double-buffered
# patch + output blocks stay under ~8 MiB -> safe on v7x (64 MiB VMEM, 32 MiB
# scoped) and leaves room for deep pipelining on v5e/v6e.
# ---------------------------------------------------------------------------
def _choose_tile(M, KKC, n_out):
    per_col_bytes = 2 * (KKC + n_out) * 4            # double-buffered, f32
    tm = 1024
    while tm > 128 and per_col_bytes * tm > 8 * 1024 * 1024:
        tm //= 2
    if M <= tm:
        return M, M                                  # single full-extent block
    m_pad = -(-M // tm) * tm
    return tm, m_pad


# ---------------------------------------------------------------------------
# Wrapper (layout plumbing in plain JAX)
# ---------------------------------------------------------------------------
def downsampling_block(x_nchw, params, n_in, n_out, eps=1e-3):
    # eps=1e-3 matches BNPReLU's nn.BatchNorm2d(nIn, eps=0.001)
    N, C, H, W = x_nchw.shape
    assert C == n_in
    n_conv = n_out - n_in if n_in < n_out else n_out

    k, stride, pad = 3, 2, 1
    Ho = (H + 2 * pad - k) // stride + 1
    Wo = (W + 2 * pad - k) // stride + 1
    M = N * Ho * Wo
    KKC = k * k * n_in

    if n_in < n_out:
        # conv output and pool output must match spatially for the channel concat
        assert H % 2 == 0 and W % 2 == 0 and Ho == H // 2 and Wo == W // 2

    # Channels-first layout (C, N, H, W): the im2col slabs land directly in the
    # transposed (9*nIn, M) layout the kernel wants (pixels on the lane axis).
    xc = jnp.transpose(x_nchw.astype(jnp.float32), (1, 0, 2, 3))
    xp = jnp.pad(xc, ((0, 0), (0, 0), (pad, pad), (pad, pad)))

    # TODO(synk): for production feature-map sizes, move the im2col into the
    # kernel (DMA 2-row strips of padded x per output-row tile) to kill the 9x
    # HBM blow-up of materializing `patches_t`.
    slabs = [xp[:, :, ky:ky + stride * Ho:stride, kx:kx + stride * Wo:stride]
                 .reshape(n_in, M)
             for ky in range(k) for kx in range(k)]
    patches_t = jnp.concatenate(slabs, axis=0)                   # (KKC, M)

    # Fold BatchNorm (inference, running stats) into scale/shift; fold BN1 scale
    # into the conv weights (free at trace time, removes one VPU mul per element).
    s1 = params["bn1_gamma"] / jnp.sqrt(params["bn1_var"] + eps)
    b1 = params["bn1_beta"] - params["bn1_mean"] * s1
    s2 = params["bn2_gamma"] / jnp.sqrt(params["bn2_var"] + eps)
    b2 = params["bn2_beta"] - params["bn2_mean"] * s2

    # (Cout, Cin, kH, kW) -> (Cout, kH*kW*Cin), matching patch row order (ky,kx,cin)
    w_t = jnp.transpose(params["conv_w"], (0, 2, 3, 1)).reshape(n_conv, KKC)
    w_t = (w_t * s1[:, None]).astype(jnp.float32)

    def pad_c(v):
        return jnp.pad(v, (0, n_out - v.shape[0]))

    zeros = jnp.zeros((n_out,), jnp.float32)
    prm = jnp.stack([pad_c(b1), pad_c(params["prelu1_alpha"]),
                     s2, b2, params["prelu2_alpha"],
                     zeros, zeros, zeros], axis=1).astype(jnp.float32)  # (n_out, 8)

    TM, M_pad = _choose_tile(M, KKC, n_out)
    if M_pad > M:
        patches_t = jnp.pad(patches_t, ((0, 0), (0, M_pad - M)))
    n_tiles = M_pad // TM

    if n_in < n_out:
        kernel = functools.partial(_downsample_concat_kernel,
                                   n_conv=n_conv, n_in=n_in)
    else:
        kernel = _downsample_kernel

    out_t = pl.pallas_call(
        kernel,
        out_shape=jax.ShapeDtypeStruct((n_out, M_pad), jnp.float32),
        grid_spec=pltpu.PrefetchScalarGridSpec(
            num_scalar_prefetch=0,
            grid=(n_tiles,),
            in_specs=[
                pl.BlockSpec((KKC, TM), lambda i: (0, i)),       # patches (lane-dense)
                pl.BlockSpec((n_conv, KKC), lambda i: (0, 0)),   # folded weights
                pl.BlockSpec((n_out, 8), lambda i: (0, 0)),      # packed BN/PReLU vecs
            ],
            out_specs=pl.BlockSpec((n_out, TM), lambda i: (0, i)),
        ),
        compiler_params=pltpu.CompilerParams(
            dimension_semantics=("parallel",),
            vmem_limit_bytes=32 * 1024 * 1024),
    )(patches_t, w_t, prm)

    out = out_t[:, :M].reshape(n_out, N, Ho, Wo)
    return jnp.transpose(out, (1, 0, 2, 3))                      # back to NCHW


# ---------------------------------------------------------------------------
# Pure-JAX reference (independent of the kernel path) for verification
# ---------------------------------------------------------------------------
def reference(x_nchw, params, n_in, n_out, eps=1e-3):
    x = jnp.transpose(x_nchw, (0, 2, 3, 1)).astype(jnp.float32)

    def bn_prelu(y, g, b, m, v, a):
        yn = (y - m) / jnp.sqrt(v + eps) * g + b
        return jnp.where(yn >= 0, yn, a * yn)

    w_hwio = jnp.transpose(params["conv_w"], (2, 3, 1, 0))
    conv = lax.conv_general_dilated(
        x, w_hwio, window_strides=(2, 2), padding=((1, 1), (1, 1)),
        dimension_numbers=("NHWC", "HWIO", "NHWC"))
    y = bn_prelu(conv, params["bn1_gamma"], params["bn1_beta"],
                 params["bn1_mean"], params["bn1_var"], params["prelu1_alpha"])
    if n_in < n_out:
        mp = lax.reduce_window(x, -jnp.inf, lax.max,
                               (1, 2, 2, 1), (1, 2, 2, 1), "VALID")
        y = jnp.concatenate([y, mp], axis=-1)
    y = bn_prelu(y, params["bn2_gamma"], params["bn2_beta"],
                 params["bn2_mean"], params["bn2_var"], params["prelu2_alpha"])
    return jnp.transpose(y, (0, 3, 1, 2))


def _make_params(key, n_in, n_out):
    n_conv = n_out - n_in if n_in < n_out else n_out
    ks = jax.random.split(key, 12)
    return {
        "conv_w":       jax.random.normal(ks[0], (n_conv, n_in, 3, 3), jnp.float32) * 0.1,
        "bn1_gamma":    jax.random.uniform(ks[1], (n_conv,), minval=0.5, maxval=1.5),
        "bn1_beta":     jax.random.normal(ks[2], (n_conv,)) * 0.1,
        "bn1_mean":     jax.random.normal(ks[3], (n_conv,)) * 0.1,
        "bn1_var":      jax.random.uniform(ks[4], (n_conv,), minval=0.5, maxval=1.5),
        "prelu1_alpha": jax.random.uniform(ks[5], (n_conv,), minval=0.1, maxval=0.4),
        "bn2_gamma":    jax.random.uniform(ks[6], (n_out,), minval=0.5, maxval=1.5),
        "bn2_beta":     jax.random.normal(ks[7], (n_out,)) * 0.1,
        "bn2_mean":     jax.random.normal(ks[8], (n_out,)) * 0.1,
        "bn2_var":      jax.random.uniform(ks[9], (n_out,), minval=0.5, maxval=1.5),
        "prelu2_alpha": jax.random.uniform(ks[10], (n_out,), minval=0.1, maxval=0.4),
    }


# ---------------------------------------------------------------------------
if __name__ == "__main__":
    root = jax.random.PRNGKey(0)
    k_x1, k_p1, k_x2, k_p2 = jax.random.split(root, 4)

    # Branch 1: nIn < nOut  (conv + max-pool channel concat)
    N, n_in, n_out, H, W = 2, 4, 8, 16, 16
    x1 = jax.random.normal(k_x1, (N, n_in, H, W), jnp.float32)
    p1 = _make_params(k_p1, n_in, n_out)
    out1 = jax.block_until_ready(downsampling_block(x1, p1, n_in, n_out))
    assert out1.shape == (N, n_out, H // 2, W // 2)
    ref1 = jax.block_until_ready(reference(x1, p1, n_in, n_out))
    np.testing.assert_allclose(np.asarray(out1), np.asarray(ref1), rtol=1e-4, atol=1e-4)

    # Branch 2: nIn >= nOut  (conv only, nConv == nOut)
    n_in2, n_out2 = 8, 8
    x2 = jax.random.normal(k_x2, (N, n_in2, H, W), jnp.float32)
    p2 = _make_params(k_p2, n_in2, n_out2)
    out2 = jax.block_until_ready(downsampling_block(x2, p2, n_in2, n_out2))
    assert out2.shape == (N, n_out2, H // 2, W // 2)
    ref2 = jax.block_until_ready(reference(x2, p2, n_in2, n_out2))
    np.testing.assert_allclose(np.asarray(out2), np.asarray(ref2), rtol=1e-4, atol=1e-4)

    print("KERNEL_OK")
</pallas_src>

<mosaic_0001>
module attributes {stable_mosaic.version = 11 : i64} {
  func.func @_downsample_concat_kernel(%arg0: i32, %arg1: memref<36x128xf32, #tpu.memory_space<vmem>>, %arg2: memref<4x36xf32, #tpu.memory_space<vmem>>, %arg3: memref<8x8xf32, #tpu.memory_space<vmem>>, %arg4: memref<8x128xf32, #tpu.memory_space<vmem>>) attributes {dimension_semantics = [#tpu.dimension_semantics<parallel>], iteration_bounds = array<i64: 1>, scalar_prefetch = 0 : i64, scratch_operands = 0 : i64, tpu.core_type = #tpu.core_type<tc>, window_params = [{transform_indices = @transform_0, window_bounds = array<i64: 36, 128>}, {pipeline_mode = #tpu.pipeline_mode<synchronous>, transform_indices = @transform_1, window_bounds = array<i64: 4, 36>}, {pipeline_mode = #tpu.pipeline_mode<synchronous>, transform_indices = @transform_2, window_bounds = array<i64: 8, 8>}, {transform_indices = @transform_3, window_bounds = array<i64: 8, 128>}]} {
    %c0 = arith.constant 0 : index
    %c0_0 = arith.constant 0 : index
    %0 = vector.load %arg1[%c0, %c0_0] : memref<36x128xf32, #tpu.memory_space<vmem>>, vector<36x128xf32>
    %c0_1 = arith.constant 0 : index
    %c0_2 = arith.constant 0 : index
    %1 = vector.load %arg2[%c0_1, %c0_2] : memref<4x36xf32, #tpu.memory_space<vmem>>, vector<4x36xf32>
    %cst = arith.constant dense<0.000000e+00> : vector<4x128xf32>
    %2 = tpu.matmul %1, %0, %cst {dimension_numbers = #tpu.dot_dimension_numbers<[1], [0], [0], [1], [0, 0, 1, 1], [], []>} : vector<4x36xf32>, vector<36x128xf32>, vector<4x128xf32> -> vector<4x128xf32>
    %c0_3 = arith.constant 0 : index
    %c0_4 = arith.constant 0 : index
    %3 = vector.load %arg3[%c0_3, %c0_4] : memref<8x8xf32, #tpu.memory_space<vmem>>, vector<8x8xf32>
    %4 = vector.extract_strided_slice %3 {offsets = [0, 0], sizes = [4, 1], strides = [1, 1]} : vector<8x8xf32> to vector<4x1xf32>
    %5 = vector.extract_strided_slice %3 {offsets = [0, 1], sizes = [4, 1], strides = [1, 1]} : vector<8x8xf32> to vector<4x1xf32>
    %6 = vector.extract_strided_slice %3 {offsets = [0, 2], sizes = [8, 1], strides = [1, 1]} : vector<8x8xf32> to vector<8x1xf32>
    %7 = vector.extract_strided_slice %3 {offsets = [0, 3], sizes = [8, 1], strides = [1, 1]} : vector<8x8xf32> to vector<8x1xf32>
    %8 = vector.extract_strided_slice %3 {offsets = [0, 4], sizes = [8, 1], strides = [1, 1]} : vector<8x8xf32> to vector<8x1xf32>
    %9 = vector.broadcast %4 : vector<4x1xf32> to vector<4x128xf32>
    %10 = arith.addf %2, %9 : vector<4x128xf32>
    %cst_5 = arith.constant 0.000000e+00 : f32
    %11 = vector.broadcast %cst_5 : f32 to vector<4x128xf32>
    %12 = arith.cmpf oge, %10, %11 : vector<4x128xf32>
    %13 = vector.broadcast %5 : vector<4x1xf32> to vector<4x128xf32>
    %14 = arith.mulf %13, %10 : vector<4x128xf32>
    %15 = arith.select %12, %10, %14 : vector<4x128xi1>, vector<4x128xf32>
    %16 = vector.extract_strided_slice %0 {offsets = [16, 0], sizes = [4, 128], strides = [1, 1]} : vector<36x128xf32> to vector<4x128xf32>
    %17 = vector.extract_strided_slice %0 {offsets = [20, 0], sizes = [4, 128], strides = [1, 1]} : vector<36x128xf32> to vector<4x128xf32>
    %18 = arith.maximumf %16, %17 : vector<4x128xf32>
    %19 = vector.extract_strided_slice %0 {offsets = [28, 0], sizes = [4, 128], strides = [1, 1]} : vector<36x128xf32> to vector<4x128xf32>
    %20 = vector.extract_strided_slice %0 {offsets = [32, 0], sizes = [4, 128], strides = [1, 1]} : vector<36x128xf32> to vector<4x128xf32>
    %21 = arith.maximumf %19, %20 : vector<4x128xf32>
    %22 = arith.maximumf %18, %21 : vector<4x128xf32>
    %23 = tpu.concatenate %15, %22 in 0 : vector<4x128xf32>, vector<4x128xf32> -> vector<8x128xf32>
    %24 = vector.broadcast %6 : vector<8x1xf32> to vector<8x128xf32>
    %25 = arith.mulf %23, %24 : vector<8x128xf32>
    %26 = vector.broadcast %7 : vector<8x1xf32> to vector<8x128xf32>
    %27 = arith.addf %25, %26 : vector<8x128xf32>
    %cst_6 = arith.constant 0.000000e+00 : f32
    %28 = vector.broadcast %cst_6 : f32 to vector<8x128xf32>
    %29 = arith.cmpf oge, %27, %28 : vector<8x128xf32>
    %30 = vector.broadcast %8 : vector<8x1xf32> to vector<8x128xf32>
    %31 = arith.mulf %30, %27 : vector<8x128xf32>
    %32 = arith.select %29, %27, %31 : vector<8x128xi1>, vector<8x128xf32>
    %c0_7 = arith.constant 0 : index
    %c0_8 = arith.constant 0 : index
    %33 = vector.load %arg4[%c0_7, %c0_8] : memref<8x128xf32, #tpu.memory_space<vmem>>, vector<8x128xf32>
    tpu.vector_store %arg4[%c0_7, %c0_8], %32 {strides = array<i32>} : memref<8x128xf32, #tpu.memory_space<vmem>>, vector<8x128xf32>,
    return
  }
  func.func @transform_0(%arg0: i32) -> (i32, i32) {
    %c0_i32 = arith.constant 0 : i32
    %c0_i32_0 = arith.constant 0 : i32
    return %c0_i32, %arg0 : i32, i32
  }
  func.func @transform_1(%arg0: i32) -> (i32, i32) {
    %c0_i32 = arith.constant 0 : i32
    %c0_i32_0 = arith.constant 0 : i32
    %c0_i32_1 = arith.constant 0 : i32
    return %c0_i32, %c0_i32_0 : i32, i32
  }
  func.func @transform_2(%arg0: i32) -> (i32, i32) {
    %c0_i32 = arith.constant 0 : i32
    %c0_i32_0 = arith.constant 0 : i32
    %c0_i32_1 = arith.constant 0 : i32
    return %c0_i32, %c0_i32_0 : i32, i32
  }
  func.func @transform_3(%arg0: i32) -> (i32, i32) {
    %c0_i32 = arith.constant 0 : i32
    %c0_i32_0 = arith.constant 0 : i32
    return %c0_i32, %arg0 : i32, i32
  }
}

</mosaic_0001>

<bundles_post_ra>
// kernel: tpu_custom_call.1
= control target key start
LH: loop header
LB: loop body
LE: loop exit
PB: predicated region body
PF: predicated region fallthrough
CT: control target
= control target key end

     0   :  { %8 = vsyncpa [#allocation3], 0  ;;  %s430_s0 = inlined_call_operand.hbm [shape: f32[36,128], index: 0, kind: input, shape index: {}]   ;;  %s431_s1 = inlined_call_operand.hbm [shape: f32[4,36], index: 1, kind: input, shape index: {}]   ;;  %s432_s2 = inlined_call_operand.hbm [shape: f32[8,8], index: 2, kind: input, shape index: {}]   ;;  %s433_s3 = inlined_call_operand.hbm [shape: f32[8,128], index: 3, kind: output, shape index: {}]  }
   0x1   :  { %9 = vsyncpa [#allocation6], 0 }
   0x2   :  { %10 = vsyncpa [#allocation4], 0  ;;  %s339_s12 = smov [#allocation5]   ;;  %s340_s14 = smov [#allocation2]  }
   0x3   :  { %s29_s13 = sshll.u32 %s339_s12, 4  ;;  %s16_s15 = sshll.u32 %s340_s14, 4  ;;  %s30_s13 = int_to_ptr.vmem [resolvable:$true] %s29_s13  ;;  %s373_s15 = int_to_ptr.vmem [resolvable:$true] %s16_s15 }
   0x4   :  { %s245_s18 = scalar_lea.hbm %s431_s1, 64 }
   0x5   :  { %p246_p0 = scmp.ne.s32.totalorder %s431_s1, %s245_s18  ;;  %p249_p1 = scmp.lt.u32.totalorder %s245_s18, %s431_s1 }
   0x7   :  { %p251_p2 = pnand %p249_p1, %p246_p0 }
   0x9   :  { %254 = shalt.err (!%p251_p2)
}
   0xa   :  { %s255_s23 = scalar_lea.vmem %s30_s13, 64  ;;  %p260_p4 = scmp.lt.s32.totalorder %s30_s13, %s30_s13 }
   0xb   :  { %p256_p3 = scmp.ne.s32.totalorder %s30_s13, %s255_s23  ;;  %p261_p5 = scmp.lt.s32.totalorder %s255_s23, %s255_s23 }
   0xd   :  { %p262_p6 = por %p261_p5, %p260_p4 }
   0xf   :  { %p263_p7 = pnand %p262_p6, %p256_p3 }
  0x11   :  { %266 = shalt.err (!%p263_p7)
}
  0x12   :  { %32 = dma.hbm_to_vmem [thread:$0]  %s431_s1, 64, %s30_s13, [#allocation6]  }
  0x13   :  { %s267_s28 = scalar_lea.hbm %s430_s0, 640 }
  0x14   :  { %p268_p8 = scmp.ne.s32.totalorder %s430_s0, %s267_s28  ;;  %p271_p9 = scmp.lt.u32.totalorder %s267_s28, %s430_s0 }
  0x16   :  { %p273_p10 = pnand %p271_p9, %p268_p8 }
  0x18   :  { %276 = shalt.err (!%p273_p10)
}
  0x19   :  { %s277_s6 = scalar_lea.vmem %s373_s15, 640  ;;  %p282_p12 = scmp.lt.s32.totalorder %s373_s15, %s373_s15 }
  0x1a   :  { %p278_p11 = scmp.ne.s32.totalorder %s373_s15, %s277_s6  ;;  %p283_p13 = scmp.lt.s32.totalorder %s277_s6, %s277_s6 }
  0x1c   :  { %p284_p0 = por %p283_p13, %p282_p12 }
  0x1e   :  { %p285_p1 = pnand %p284_p0, %p278_p11 }
  0x20   :  { %288 = shalt.err (!%p285_p1)
}
  0x21   :  { %s341_s1 = smov 128   ;;  %s342_s7 = smov 8  }
  0x22   :  { %22 = dma.hbm_to_vmem [thread:$0]  %s430_s0, 640, %s373_s15, [#allocation3], %s341_s1, %s341_s1, %s342_s7  }
  0x23   :  { %s343_s10 = smov [#allocation7]   ;;  %s289_s14 = scalar_lea.hbm %s432_s2, 128 }
  0x24   :  { %s39_s11 = sshll.u32 %s343_s10, 4  ;;  %p290_p2 = scmp.ne.s32.totalorder %s432_s2, %s289_s14  ;;  %s40_s11 = int_to_ptr.vmem [resolvable:$true] %s39_s11 }
  0x25   :  { %p293_p3 = scmp.lt.u32.totalorder %s289_s14, %s432_s2 }
  0x27   :  { %p295_p4 = pnand %p293_p3, %p290_p2 }
  0x29   :  { %298 = shalt.err (!%p295_p4)
}
  0x2a   :  { %s299_s20 = scalar_lea.vmem %s40_s11, 128  ;;  %p304_p6 = scmp.lt.s32.totalorder %s40_s11, %s40_s11 }
  0x2b   :  { %p300_p5 = scmp.ne.s32.totalorder %s40_s11, %s299_s20  ;;  %p305_p7 = scmp.lt.s32.totalorder %s299_s20, %s299_s20 }
  0x2d   :  { %p306_p8 = por %p305_p7, %p304_p6 }
  0x2f   :  { %p307_p9 = pnand %p306_p8, %p300_p5 }
  0x31   :  { %310 = shalt.err (!%p307_p9)
}
  0x32   :  { %42 = dma.hbm_to_vmem [thread:$0]  %s432_s2, 128, %s40_s11, [#allocation6]  }
  0x33   :  { %333 = dma.done.wait [#allocation3], 640  }
  0x34   :  { %334 = vsyncadd [#allocation3], 4294966656 }
  0x35   :  { %335 = dma.done.wait [#allocation6], 192  }
  0x36   :  { %336 = vsyncadd [#allocation6], 4294967104  ;;  %v344_v0 = vmov 0.0|0.0   ;;  %vm345_vm0 = vmmov 0   ;;  %v346_v1 = vmov 0.0   ;;  %v347_v2 = vmov 0  }
  0x37   :  { %219 = vmatprep.subr.bf16.mxu0 %v344_v0  ;;  %216 = vmatprep.mubr.msk.f32.mxu0 %vm345_vm0, %v346_v1  ;;  %v348_v3 = vmov 2   ;;  %v52_v4 = vld [vmem:[#allocation2] sm:$0xff]  ;;  %v53_v5 = vld [vmem:[#allocation2 + $0x8] sm:$0xff]  ;;  %v54_v6 = vld [vmem:[#allocation2 + $0x10] sm:$0xff]  ;;  %v349_v14 = vmov 1   ;;  %vm68_vm1 = vcmask 1043456  }
  0x38   :  { %239 = vset.pattern.permute.xlu0 %v347_v2  ;;  %241 = vset.pattern.permute.xlu1 %v348_v3  ;;  %v220_v7 = vpack.c.bf16 %v53_v5, %v52_v4  ;;  %v55_v8 = vld [vmem:[#allocation2 + $0x18] sm:$0xff]  ;;  %v56_v9 = vld [vmem:[#allocation2 + $0x20] sm:$0xf]  ;;  %v58_v11 = vld [vmem:[#allocation7] sm:$0xff]  ;;  %vm64_vm2 = vcmask 293888   ;;  %v350_v16 = vmov 3  }
  0x39   :  { %v153_v10 = vrot.slane %v56_v9, 4  ;;  %v223_v12 = vpack.c.bf16 %v55_v8, %v54_v6  ;;  %61 = vperm.xlu0 %239, %v58_v11   ;;  %165 = vperm.xlu1 %241, %v58_v11   ;;  %v57_v15 = vld [vmem:[#allocation5] sm:$0xf]  ;;  %v351_v17 = vmov 4   ;;  %v150_v18 = vrot.slane %v54_v6, 4  ;;  %s352_s2 = smov [#allocation8]  }
  0x3a   :  { %221 = vmatpush3.bf16.msra.mxu0 %v220_v7  ;;  %s188_s21 = sshll.u32 %s352_s2, 4  ;;  %s189_s21 = int_to_ptr.vmem [resolvable:$true] %s188_s21 }
  0x3b   :  { %222 = vmatprep.subr.bf16.mxu0 %v344_v0  ;;  %v155_v13 = vmax.f32 %v55_v8, %v153_v10  ;;  %v152_v19 = vmax.f32 %v54_v6, %v150_v18  ;;  %s311_s22 = scalar_lea.vmem %s189_s21, 128  ;;  %p316_p11 = scmp.lt.s32.totalorder %s189_s21, %s189_s21 }
  0x3c   :  { %p312_p10 = scmp.ne.s32.totalorder %s189_s21, %s311_s22  ;;  %p317_p12 = scmp.lt.s32.totalorder %s311_s22, %s311_s22 }
  0x3d   :  { %240 = vset.pattern.permute.xlu0 %v349_v14  ;;  %242 = vset.pattern.permute.xlu1 %v350_v16  ;;  %v157_v20 = vrot.slane %v155_v13, 4 }
  0x3e   :  { %224 = vmatpush3.bf16.msra.mxu0 %v223_v12  ;;  %144 = vperm.xlu0 %240, %v58_v11   ;;  %p318_p13 = por %p317_p12, %p316_p11 }
  0x3f   :  { %214 = vmatprep.subr.mxu0 %v346_v1  ;;  %170 = vperm.xlu1 %242, %v58_v11   ;;  %v159_v21 = vmax.f32 %v152_v19, %v157_v20 }
  0x40   :  { %p319_p0 = pnand %p318_p13, %p312_p10 }
  0x41   :  { %v161_v29 = vrot.slane %v159_v21, 4 }
  0x42   :  { %215 = vmatpush3.msk.msra.mxu0 %vm68_vm1, %v56_v9  ;;  %244 = vset.pattern.permute.xlu0 %v351_v17 }
  0x43   :  { %217 = vmatmul.mubr.msk.f32.vlgmr.msra.gmra.mrb[0].mxu0 %vm64_vm2, %v57_v15  ;;  %243 = vset.pattern.permute.xlu1 %v351_v17 }
  0x44   :  { %176 = vperm.xlu1 %243, %v58_v11  }
  0xb8   :  { %v62_v22 = vpop.permute.xlu0 %61  ;;  %v166_v23 = vpop.permute.xlu1 %165 }
  0xbd   :  { %v145_v25 = vpop.permute.xlu0 %144 }
  0xbe   :  { %v171_v28 = vpop.permute.xlu1 %170 }
  0xc3   :  { %v177_v34 = vpop.permute.xlu1 %176 }
 0x116   :  { %v138_v24 = vpop.f32.mrb[0].mxu0 }
 0x117   :  { %v139_v26 = vadd.f32 %v138_v24, %v62_v22  ;;  %v218_v27 = vpop.f32.mrb[1].mxu0 }
 0x119   :  { %vm142_vm3 = vcmp.ge.f32.partialorder %v139_v26, 0.0  ;;  %v147_v30 = vmul.f32 %v145_v25, %v139_v26 }
 0x11b   :  { %v148_v31 = vsel %vm142_vm3, %v139_v26, %v147_v30 }
 0x11c   :  { %v163_v32 = vsel %vm68_vm1, %v148_v31, %v161_v29 }
 0x11d   :  { %v168_v33 = vmul.f32 %v166_v23, %v163_v32 }
 0x11f   :  { %v173_v35 = vadd.f32 %v171_v28, %v168_v33 }
 0x121   :  { %v179_v36 = vmul.f32 %v177_v34, %v173_v35  ;;  %vm174_vm4 = vcmp.ge.f32.partialorder %v173_v35, 0.0 }
 0x123   :  { %v180_v37 = vsel %vm174_vm4, %v173_v35, %v179_v36 }
 0x124   :  { %181 = vst [vmem:[#allocation8] sm:$0xff] %v180_v37 }
 0x125   :  { %322 = shalt.err (!%p319_p0)
}
 0x126   :  { %s323_s25 = scalar_lea.hbm %s433_s3, 128 }
 0x127   :  { %p324_p1 = scmp.ne.s32.totalorder %s433_s3, %s323_s25  ;;  %p327_p2 = scmp.lt.u32.totalorder %s323_s25, %s433_s3 }
 0x129   :  { %p329_p3 = pnand %p327_p2, %p324_p1 }
 0x12b   :  { %332 = shalt.err (!%p329_p3)
}
 0x12c   :  { %191 = dma.vmem_to_hbm [thread:$0]  %s189_s21, 128, %s433_s3, [#allocation4]  }
 0x12d   :  { %337 = dma.done.wait [#allocation4], 128  }
 0x12e   :  { %338 = vsyncadd [#allocation4], 4294967168 }
 0x12f   :  { %195 = vsyncpa [#allocation3], 1 }
 0x130   :  { %196 = vsyncpa [#allocation6], 1 }
 0x131   :  { %197 = vsyncpa [#allocation4], 1 }

</bundles_post_ra>
